<compile_context>
chip_gen: v6e
topology: v6e:2x2x1
jax: 0.10.0
libtpu: 0.0.40
codegen_flags: <defaults>
</compile_context>

<pallas_src>
import functools

import jax
import jax.numpy as jnp
from jax.experimental import pallas as pl
from jax.experimental.pallas import tpu as pltpu


def _round_up(n, m):
    return ((n + m - 1) // m) * m


def policy_kernel(x_ref, w1_ref, b1_ref, w2_ref, b2_ref, w3d_ref, b3d_ref, out_ref):
    """One batch tile: affine1+ReLU -> affine2+ReLU -> affine3 -> softmax (2 classes)."""
    x = x_ref[...]                                    # (BM, 4)   f32
    w1 = w1_ref[...]                                  # (4, 128)  f32

    # ---- affine1 + ReLU on the VPU (K=4 is far too degenerate for the MXU) ----
    h1 = (x[:, 0:1] * w1[0:1, :]
          + x[:, 1:2] * w1[1:2, :]
          + x[:, 2:3] * w1[2:3, :]
          + x[:, 3:4] * w1[3:4, :]
          + b1_ref[...])
    h1 = jnp.maximum(h1, 0.0)                         # (BM, 128) f32

    # ---- affine2 + ReLU: the only "real" matmul -> MXU, bf16 in / f32 accumulate ----
    h2 = jnp.dot(h1.astype(jnp.bfloat16), w2_ref[...],
                 preferred_element_type=jnp.float32) + b2_ref[...]
    h2 = jnp.maximum(h2, 0.0)                         # (BM, 256) f32

    # ---- affine3 + 2-class softmax ----
    # Only the logit difference matters: softmax([l0, l1]) = [sigmoid(l0-l1), 1-sigmoid(l0-l1)].
    # w3d = w3[:,0]-w3[:,1] (1,256), b3d = b3[0]-b3[1] (1,1): VPU multiply + one XLU lane
    # reduce + EUP exp/approx-recip, all in slots that co-issue with the layer-2 matmul.
    d = jnp.sum(h2 * w3d_ref[...], axis=-1, keepdims=True) + b3d_ref[...]   # (BM, 1)
    p0 = pl.reciprocal(1.0 + jnp.exp(-d), approx=True)
    out_ref[:, 0:1] = p0
    out_ref[:, 1:2] = 1.0 - p0                        # exact row-sum of 1


@functools.partial(jax.jit, static_argnames=("block_b",))
def policy_forward(x, params, block_b=512):
    """Softmax action probabilities for a batch of 4-d states. x: (B, 4) float32."""
    w1, b1, w2, b2, w3, b3 = params
    B = x.shape[0]

    # Batch tile: big enough to amortize the ~600-cycle per-grid-step overhead,
    # never larger than the (8-rounded) batch itself.
    BM = min(block_b, _round_up(B, 8))
    Bp = _round_up(B, BM)
    if Bp != B:
        x = jnp.pad(x, ((0, Bp - B), (0, 0)))

    # Tiny one-off parameter transforms (fused into the surrounding jit):
    #  - the big (128,256) weight feeds the MXU in bf16 (halves its DMA bytes),
    #  - layer 3 collapses to the logit-difference vector for the 2-class softmax.
    w2_bf16 = w2.astype(jnp.bfloat16)
    w3d = (w3[:, 0] - w3[:, 1]).reshape(1, -1)        # (1, 256) f32
    b3d = (b3[:, 0] - b3[:, 1]).reshape(1, 1)         # (1, 1)   f32

    const = lambda i: (0, 0)                          # weights: revisited block, no re-DMA
    out = pl.pallas_call(
        policy_kernel,
        out_shape=jax.ShapeDtypeStruct((Bp, 2), jnp.float32),
        grid=(Bp // BM,),
        in_specs=[
            pl.BlockSpec((BM, 4), lambda i: (i, 0)),
            pl.BlockSpec(w1.shape, const),
            pl.BlockSpec(b1.shape, const),
            pl.BlockSpec(w2.shape, const),
            pl.BlockSpec(b2.shape, const),
            pl.BlockSpec((1, w3.shape[0]), const),
            pl.BlockSpec((1, 1), const),
        ],
        out_specs=pl.BlockSpec((BM, 2), lambda i: (i, 0)),
        compiler_params=pltpu.CompilerParams(
            dimension_semantics=("parallel",)),       # shards the batch grid across v7x's 2 TCs
    )(x, w1, b1, w2_bf16, b2, w3d, b3d)
    return out[:B]


def policy_ref(x, params):
    """Pure-JAX f32 reference (matches the PyTorch module's forward)."""
    w1, b1, w2, b2, w3, b3 = params
    h1 = jnp.maximum(x @ w1 + b1, 0.0)
    h2 = jnp.maximum(h1 @ w2 + b2, 0.0)
    return jax.nn.softmax(h2 @ w3 + b3, axis=-1)


def init_params(key):
    """Deterministic init mimicking PyTorch nn.Linear default U(-1/sqrt(fan_in), 1/sqrt(fan_in))."""
    def linear(key, fan_in, fan_out):
        kw, kb = jax.random.split(key)
        bound = 1.0 / jnp.sqrt(fan_in)
        w = jax.random.uniform(kw, (fan_in, fan_out), jnp.float32, -bound, bound)  # (in, out)
        b = jax.random.uniform(kb, (1, fan_out), jnp.float32, -bound, bound)
        return w, b

    k1, k2, k3 = jax.random.split(key, 3)
    w1, b1 = linear(k1, 4, 128)
    w2, b2 = linear(k2, 128, 256)
    w3, b3 = linear(k3, 256, 2)
    return w1, b1, w2, b2, w3, b3


if __name__ == "__main__":
    key = jax.random.PRNGKey(0)
    kx, kp = jax.random.split(key)

    B = 16                                   # small batch of CartPole-style states
    x = jax.random.normal(kx, (B, 4), jnp.float32)
    params = init_params(kp)

    # Single-tile path (default block_b covers the whole small batch)...
    probs = jax.block_until_ready(policy_forward(x, params))
    # ...and the multi-step gridded path (BM=8 -> grid=(2,)) to exercise the
    # revisited-weight-block pipeline at small shapes.
    probs_grid = jax.block_until_ready(policy_forward(x, params, block_b=8))

    ref = policy_ref(x, params)

    assert probs.shape == (B, 2)
    # rows sum to 1 exactly by construction (p1 = 1 - p0)
    assert bool(jnp.allclose(jnp.sum(probs, axis=-1), 1.0, atol=1e-5))
    # bf16 layer-2 + approx reciprocal -> loose tolerance vs. the f32 reference
    assert bool(jnp.allclose(probs, ref, atol=2e-2))
    assert bool(jnp.allclose(probs_grid, ref, atol=2e-2))

    print("KERNEL_OK")
</pallas_src>

<mosaic_0001>
module attributes {stable_mosaic.version = 11 : i64} {
  func.func @policy_kernel(%arg0: i32, %arg1: memref<16x4xf32, #tpu.memory_space<vmem>>, %arg2: memref<4x128xf32, #tpu.memory_space<vmem>>, %arg3: memref<1x128xf32, #tpu.memory_space<vmem>>, %arg4: memref<128x256xbf16, #tpu.memory_space<vmem>>, %arg5: memref<1x256xf32, #tpu.memory_space<vmem>>, %arg6: memref<1x256xf32, #tpu.memory_space<vmem>>, %arg7: memref<1x1xf32, #tpu.memory_space<vmem>>, %arg8: memref<16x2xf32, #tpu.memory_space<vmem>>) attributes {dimension_semantics = [#tpu.dimension_semantics<parallel>], iteration_bounds = array<i64: 1>, scalar_prefetch = 0 : i64, scratch_operands = 0 : i64, tpu.core_type = #tpu.core_type<tc>, window_params = [{transform_indices = @transform_0, window_bounds = array<i64: 16, 4>}, {pipeline_mode = #tpu.pipeline_mode<synchronous>, transform_indices = @transform_1, window_bounds = array<i64: 4, 128>}, {pipeline_mode = #tpu.pipeline_mode<synchronous>, transform_indices = @transform_2, window_bounds = array<i64: 1, 128>}, {pipeline_mode = #tpu.pipeline_mode<synchronous>, transform_indices = @transform_3, window_bounds = array<i64: 128, 256>}, {pipeline_mode = #tpu.pipeline_mode<synchronous>, transform_indices = @transform_4, window_bounds = array<i64: 1, 256>}, {pipeline_mode = #tpu.pipeline_mode<synchronous>, transform_indices = @transform_5, window_bounds = array<i64: 1, 256>}, {pipeline_mode = #tpu.pipeline_mode<synchronous>, transform_indices = @transform_6, window_bounds = array<i64: 1, 1>}, {transform_indices = @transform_7, window_bounds = array<i64: 16, 2>}]} {
    %c0 = arith.constant 0 : index
    %c0_0 = arith.constant 0 : index
    %0 = vector.load %arg1[%c0, %c0_0] : memref<16x4xf32, #tpu.memory_space<vmem>>, vector<16x4xf32>
    %c0_1 = arith.constant 0 : index
    %c0_2 = arith.constant 0 : index
    %1 = vector.load %arg2[%c0_1, %c0_2] : memref<4x128xf32, #tpu.memory_space<vmem>>, vector<4x128xf32>
    %2 = vector.extract_strided_slice %0 {offsets = [0, 0], sizes = [16, 1], strides = [1, 1]} : vector<16x4xf32> to vector<16x1xf32>
    %3 = vector.extract_strided_slice %1 {offsets = [0, 0], sizes = [1, 128], strides = [1, 1]} : vector<4x128xf32> to vector<1x128xf32>
    %4 = vector.broadcast %2 : vector<16x1xf32> to vector<16x128xf32>
    %5 = vector.broadcast %3 : vector<1x128xf32> to vector<16x128xf32>
    %6 = arith.mulf %4, %5 : vector<16x128xf32>
    %7 = vector.extract_strided_slice %0 {offsets = [0, 1], sizes = [16, 1], strides = [1, 1]} : vector<16x4xf32> to vector<16x1xf32>
    %8 = vector.extract_strided_slice %1 {offsets = [1, 0], sizes = [1, 128], strides = [1, 1]} : vector<4x128xf32> to vector<1x128xf32>
    %9 = vector.broadcast %7 : vector<16x1xf32> to vector<16x128xf32>
    %10 = vector.broadcast %8 : vector<1x128xf32> to vector<16x128xf32>
    %11 = arith.mulf %9, %10 : vector<16x128xf32>
    %12 = arith.addf %6, %11 : vector<16x128xf32>
    %13 = vector.extract_strided_slice %0 {offsets = [0, 2], sizes = [16, 1], strides = [1, 1]} : vector<16x4xf32> to vector<16x1xf32>
    %14 = vector.extract_strided_slice %1 {offsets = [2, 0], sizes = [1, 128], strides = [1, 1]} : vector<4x128xf32> to vector<1x128xf32>
    %15 = vector.broadcast %13 : vector<16x1xf32> to vector<16x128xf32>
    %16 = vector.broadcast %14 : vector<1x128xf32> to vector<16x128xf32>
    %17 = arith.mulf %15, %16 : vector<16x128xf32>
    %18 = arith.addf %12, %17 : vector<16x128xf32>
    %19 = vector.extract_strided_slice %0 {offsets = [0, 3], sizes = [16, 1], strides = [1, 1]} : vector<16x4xf32> to vector<16x1xf32>
    %20 = vector.extract_strided_slice %1 {offsets = [3, 0], sizes = [1, 128], strides = [1, 1]} : vector<4x128xf32> to vector<1x128xf32>
    %21 = vector.broadcast %19 : vector<16x1xf32> to vector<16x128xf32>
    %22 = vector.broadcast %20 : vector<1x128xf32> to vector<16x128xf32>
    %23 = arith.mulf %21, %22 : vector<16x128xf32>
    %24 = arith.addf %18, %23 : vector<16x128xf32>
    %c0_3 = arith.constant 0 : index
    %c0_4 = arith.constant 0 : index
    %25 = vector.load %arg3[%c0_3, %c0_4] : memref<1x128xf32, #tpu.memory_space<vmem>>, vector<1x128xf32>
    %26 = vector.broadcast %25 : vector<1x128xf32> to vector<16x128xf32>
    %27 = arith.addf %24, %26 : vector<16x128xf32>
    %cst = arith.constant 0.000000e+00 : f32
    %28 = vector.broadcast %cst : f32 to vector<16x128xf32>
    %29 = arith.maximumf %27, %28 : vector<16x128xf32>
    %30 = arith.truncf %29 : vector<16x128xf32> to vector<16x128xbf16>
    %c0_5 = arith.constant 0 : index
    %c0_6 = arith.constant 0 : index
    %31 = vector.load %arg4[%c0_5, %c0_6] : memref<128x256xbf16, #tpu.memory_space<vmem>>, vector<128x256xbf16>
    %cst_7 = arith.constant dense<0.000000e+00> : vector<16x256xf32>
    %32 = tpu.matmul %30, %31, %cst_7 {dimension_numbers = #tpu.dot_dimension_numbers<[1], [0], [0], [1], [0, 0, 1, 1], [], []>} : vector<16x128xbf16>, vector<128x256xbf16>, vector<16x256xf32> -> vector<16x256xf32>
    %c0_8 = arith.constant 0 : index
    %c0_9 = arith.constant 0 : index
    %33 = vector.load %arg5[%c0_8, %c0_9] : memref<1x256xf32, #tpu.memory_space<vmem>>, vector<1x256xf32>
    %34 = vector.broadcast %33 : vector<1x256xf32> to vector<16x256xf32>
    %35 = arith.addf %32, %34 : vector<16x256xf32>
    %cst_10 = arith.constant 0.000000e+00 : f32
    %36 = vector.broadcast %cst_10 : f32 to vector<16x256xf32>
    %37 = arith.maximumf %35, %36 : vector<16x256xf32>
    %c0_11 = arith.constant 0 : index
    %c0_12 = arith.constant 0 : index
    %38 = vector.load %arg6[%c0_11, %c0_12] : memref<1x256xf32, #tpu.memory_space<vmem>>, vector<1x256xf32>
    %39 = vector.broadcast %38 : vector<1x256xf32> to vector<16x256xf32>
    %40 = arith.mulf %37, %39 : vector<16x256xf32>
    %cst_13 = arith.constant dense<0.000000e+00> : vector<16xf32>
    %41 = vector.multi_reduction <add>, %40, %cst_13 [1] : vector<16x256xf32> to vector<16xf32>
    %42 = vector.shape_cast %41 : vector<16xf32> to vector<16x1xf32>
    %c0_14 = arith.constant 0 : index
    %c0_15 = arith.constant 0 : index
    %43 = vector.load %arg7[%c0_14, %c0_15] : memref<1x1xf32, #tpu.memory_space<vmem>>, vector<1x1xf32>
    %44 = vector.broadcast %43 : vector<1x1xf32> to vector<16x1xf32>
    %45 = arith.addf %42, %44 : vector<16x1xf32>
    %cst_16 = arith.constant 0.000000e+00 : f32
    %46 = vector.broadcast %cst_16 : f32 to vector<16x1xf32>
    %47 = arith.subf %46, %45 : vector<16x1xf32>
    %48 = math.exp %47 : vector<16x1xf32>
    %cst_17 = arith.constant 1.000000e+00 : f32
    %49 = vector.broadcast %cst_17 : f32 to vector<16x1xf32>
    %50 = arith.addf %49, %48 : vector<16x1xf32>
    %51 = tpu.reciprocal %50 {approx = true} : vector<16x1xf32> -> vector<16x1xf32>
    %c0_18 = arith.constant 0 : index
    %c0_19 = arith.constant 0 : index
    %52 = vector.load %arg8[%c0_18, %c0_19] : memref<16x2xf32, #tpu.memory_space<vmem>>, vector<16x1xf32>
    tpu.vector_store %arg8[%c0_18, %c0_19], %51 {strides = array<i32>} : memref<16x2xf32, #tpu.memory_space<vmem>>, vector<16x1xf32>,
    %cst_20 = arith.constant 1.000000e+00 : f32
    %53 = vector.broadcast %cst_20 : f32 to vector<16x1xf32>
    %54 = arith.subf %53, %51 : vector<16x1xf32>
    %c0_21 = arith.constant 0 : index
    %c1 = arith.constant 1 : index
    %55 = vector.load %arg8[%c0_21, %c1] : memref<16x2xf32, #tpu.memory_space<vmem>>, vector<16x1xf32>
    tpu.vector_store %arg8[%c0_21, %c1], %54 {strides = array<i32>} : memref<16x2xf32, #tpu.memory_space<vmem>>, vector<16x1xf32>,
    return
  }
  func.func @transform_0(%arg0: i32) -> (i32, i32) {
    %c0_i32 = arith.constant 0 : i32
    %c0_i32_0 = arith.constant 0 : i32
    return %arg0, %c0_i32 : i32, i32
  }
  func.func @transform_1(%arg0: i32) -> (i32, i32) {
    %c0_i32 = arith.constant 0 : i32
    %c0_i32_0 = arith.constant 0 : i32
    %c0_i32_1 = arith.constant 0 : i32
    return %c0_i32, %c0_i32_0 : i32, i32
  }
  func.func @transform_2(%arg0: i32) -> (i32, i32) {
    %c0_i32 = arith.constant 0 : i32
    %c0_i32_0 = arith.constant 0 : i32
    %c0_i32_1 = arith.constant 0 : i32
    return %c0_i32, %c0_i32_0 : i32, i32
  }
  func.func @transform_3(%arg0: i32) -> (i32, i32) {
    %c0_i32 = arith.constant 0 : i32
    %c0_i32_0 = arith.constant 0 : i32
    %c0_i32_1 = arith.constant 0 : i32
    return %c0_i32, %c0_i32_0 : i32, i32
  }
  func.func @transform_4(%arg0: i32) -> (i32, i32) {
    %c0_i32 = arith.constant 0 : i32
    %c0_i32_0 = arith.constant 0 : i32
    %c0_i32_1 = arith.constant 0 : i32
    return %c0_i32, %c0_i32_0 : i32, i32
  }
  func.func @transform_5(%arg0: i32) -> (i32, i32) {
    %c0_i32 = arith.constant 0 : i32
    %c0_i32_0 = arith.constant 0 : i32
    %c0_i32_1 = arith.constant 0 : i32
    return %c0_i32, %c0_i32_0 : i32, i32
  }
  func.func @transform_6(%arg0: i32) -> (i32, i32) {
    %c0_i32 = arith.constant 0 : i32
    %c0_i32_0 = arith.constant 0 : i32
    %c0_i32_1 = arith.constant 0 : i32
    return %c0_i32, %c0_i32_0 : i32, i32
  }
  func.func @transform_7(%arg0: i32) -> (i32, i32) {
    %c0_i32 = arith.constant 0 : i32
    %c0_i32_0 = arith.constant 0 : i32
    return %arg0, %c0_i32 : i32, i32
  }
}

</mosaic_0001>

<bundles_post_ra>
// kernel: policy_forward.1
= control target key start
LH: loop header
LB: loop body
LE: loop exit
PB: predicated region body
PF: predicated region fallthrough
CT: control target
= control target key end

     0   :  { %v385_v0 = vmov 1   ;;  %v386_v1 = vmov 0   ;;  %v387_v10 = vmov 2   ;;  %v388_v14 = vmov 3   ;;  %s511_s0 = inlined_call_operand.vmem [shape: f32[16,4], index: 0, kind: input, shape index: {}]   ;;  %s512_s3 = inlined_call_operand.vmem [shape: bf16[128,256], index: 3, kind: input, shape index: {}]   ;;  %s513_s1 = inlined_call_operand.vmem [shape: f32[4,128], index: 1, kind: input, shape index: {}]   ;;  %s514_s2 = inlined_call_operand.vmem [shape: f32[1,128], index: 2, kind: input, shape index: {}]   ;;  %s515_s6 = inlined_call_operand.<no memory space> [shape: f32[1,1], index: 6, kind: input, shape index: {}]   ;;  %s516_s4 = inlined_call_operand.vmem [shape: f32[1,256], index: 4, kind: input, shape index: {}]   ;;  %s517_s5 = inlined_call_operand.vmem [shape: f32[1,256], index: 5, kind: input, shape index: {}]   ;;  %s518_s7 = inlined_call_operand.vmem [shape: f32[16,2], index: 7, kind: output, shape index: {}]  }
   0x1   :  { %348 = vset.pattern.permute.xlu1 %v385_v0  ;;  %347 = vset.pattern.permute.xlu0 %v386_v1  ;;  %v29_v2 = vld [vmem:[%s511_s0] sm:$0xff]  ;;  %v30_v3 = vld [vmem:[%s511_s0 + $0x8] sm:$0xff]  ;;  %v353_v4 = vld [vmem:[%s512_s3 + $0x74] ss:$8 sps:$4 sm:$0xff]   ;;  %v42_v22 = vlaneseq  ;;  %v12_v61 = vstv %s515_s6  ;;  %vm304_vm0 = vcmask 7168   ;;  %s389_s6 = smov 1  }
   0x2   :  { %49 = vperm.xlu1 %348, %v29_v2   ;;  %34 = vperm.xlu0 %347, %v29_v2   ;;  %v355_v5 = vld [vmem:[%s512_s3 + $0x70] ss:$8 sps:$4 sm:$0xff]   ;;  %v356_v6 = vld [vmem:[%s512_s3 + $0x64] ss:$8 sps:$4 sm:$0xff]   ;;  %v358_v7 = vld [vmem:[%s512_s3 + $0x60] ss:$8 sps:$4 sm:$0xff]  }
   0x3   :  { %248 = vmatprep.mubr.bf16.mxu0 %v386_v1  ;;  %216 = vmatprep.subr.bf16.mxu0 %v353_v4  ;;  %v359_v8 = vld [vmem:[%s512_s3 + $0x54] ss:$8 sps:$4 sm:$0xff]   ;;  %v361_v9 = vld [vmem:[%s512_s3 + $0x50] ss:$8 sps:$4 sm:$0xff]   ;;  %v362_v11 = vld [vmem:[%s512_s3 + $0x44] ss:$8 sps:$4 sm:$0xff]  }
   0x4   :  { %217 = vmatpush1.bf16.msra.mxu0 %v355_v5  ;;  %v364_v12 = vld [vmem:[%s512_s3 + $0x40] ss:$8 sps:$4 sm:$0xff]   ;;  %v365_v13 = vld [vmem:[%s512_s3 + $0x34] ss:$8 sps:$4 sm:$0xff]   ;;  %v367_v15 = vld [vmem:[%s512_s3 + $0x30] ss:$8 sps:$4 sm:$0xff]  }
   0x5   :  { %218 = vmatprep.subr.bf16.mxu0 %v356_v6  ;;  %v368_v16 = vld [vmem:[%s512_s3 + $0x24] ss:$8 sps:$4 sm:$0xff]   ;;  %v370_v17 = vld [vmem:[%s512_s3 + $0x20] ss:$8 sps:$4 sm:$0xff]   ;;  %v371_v18 = vld [vmem:[%s512_s3 + $0x14] ss:$8 sps:$4 sm:$0xff]  }
   0x6   :  { %53 = vperm.xlu1 %348, %v30_v3   ;;  %39 = vperm.xlu0 %347, %v30_v3   ;;  %v373_v19 = vld [vmem:[%s512_s3 + $0x10] ss:$8 sps:$4 sm:$0xff]   ;;  %v374_v20 = vld [vmem:[%s512_s3 + $0x4] ss:$8 sps:$4 sm:$0xff]   ;;  %v376_v21 = vld [vmem:[%s512_s3] ss:$8 sps:$4 sm:$0xff]  }
   0x7   :  { %v43_v23 = vshrl.u32 %v42_v22, 7  ;;  %v31_v28 = vld [vmem:[%s513_s1] sm:$0xf]  ;;  %13 = vst [vmem:[#allocation2] sm:$0x1] %v12_v61  ;;  %vm317_vm1 = vcmask 15368  }
   0x8   :  { %219 = vmatpush1.bf16.msra.mxu0 %v358_v7  ;;  %v324_v53 = vld [vmem:[%s514_s2] ss:$0 sm:$0xff] }
   0x9   :  { %220 = vmatprep.subr.bf16.mxu0 %v359_v8  ;;  %v58_v26 = vsub.s32 1, %v43_v23  ;;  %v44_v27 = vsub.s32 0, %v43_v23  ;;  %v74_v29 = vsub.s32 2, %v43_v23  ;;  %v90_v35 = vsub.s32 3, %v43_v23  ;;  %v124_v62 = vld [vmem:[%s516_s4] sm:$0x3] }
   0xa   :  { %350 = vset.pattern.permute.xlu1 %v387_v10  ;;  %349 = vset.pattern.permute.xlu0 %v387_v10 }
   0xb   :  { %69 = vperm.xlu1 %350, %v30_v3   ;;  %65 = vperm.xlu0 %349, %v29_v2   ;;  %v59_v32 = vrot.slane %v31_v28, %v58_v26  ;;  %v45_v33 = vrot.slane %v31_v28, %v44_v27  ;;  %v75_v34 = vrot.slane %v31_v28, %v74_v29 }
   0xc   :  { %221 = vmatpush1.bf16.msra.mxu0 %v361_v9  ;;  %v91_v44 = vrot.slane %v31_v28, %v90_v35  ;;  %v129_v63 = vrot.slane %v124_v62, %v44_v27  ;;  %v133_v0 = vrot.slane %v124_v62, %v58_v26 }
   0xd   :  { %222 = vmatprep.subr.bf16.mxu0 %v362_v11 }
   0xe   :  { %v341_v22 = vld [vmem:[#allocation2] ss:$0 sm:$0xff] }
   0xf   :  { %351 = vset.pattern.permute.xlu1 %v388_v14  ;;  %352 = vset.pattern.permute.xlu0 %v388_v14 }
  0x10   :  { %81 = vperm.xlu1 %351, %v29_v2   ;;  %85 = vperm.xlu0 %352, %v30_v3   ;;  %v263_v2 = vld [vmem:[%s517_s5] sm:$0x3] }
  0x11   :  { %223 = vmatpush1.bf16.msra.mxu0 %v364_v12  ;;  %v268_v6 = vrot.slane %v263_v2, %v44_v27  ;;  %v272_v8 = vrot.slane %v263_v2, %v58_v26 }
  0x12   :  { %224 = vmatprep.subr.bf16.mxu0 %v365_v13 }
  0x15   :  { %225 = vmatpush1.bf16.msra.mxu0 %v367_v15 }
  0x16   :  { %226 = vmatprep.subr.bf16.mxu0 %v368_v16 }
  0x19   :  { %227 = vmatpush1.bf16.msra.mxu0 %v370_v17 }
  0x1a   :  { %228 = vmatprep.subr.bf16.mxu0 %v371_v18 }
  0x1d   :  { %229 = vmatpush1.bf16.msra.mxu0 %v373_v19 }
  0x1e   :  { %230 = vmatprep.subr.bf16.mxu0 %v374_v20 }
  0x21   :  { %231 = vmatpush1.bf16.msra.mxu0 %v376_v21 }
  0x7d   :  { %v50_v24 = vpop.permute.xlu1 %49  ;;  %v35_v25 = vpop.permute.xlu0 %34 }
  0x7e   :  { %v60_v36 = vmul.f32 %v59_v32, %v50_v24  ;;  %v46_v37 = vmul.f32 %v45_v33, %v35_v25 }
  0x80   :  { %v62_v45 = vadd.f32 %v60_v36, %v46_v37 }
  0x81   :  { %v54_v30 = vpop.permute.xlu1 %53  ;;  %v40_v31 = vpop.permute.xlu0 %39 }
  0x82   :  { %v61_v38 = vmul.f32 %v59_v32, %v54_v30  ;;  %v47_v39 = vmul.f32 %v45_v33, %v40_v31 }
  0x84   :  { %v63_v46 = vadd.f32 %v61_v38, %v47_v39 }
  0x86   :  { %v70_v40 = vpop.permute.xlu1 %69  ;;  %v66_v41 = vpop.permute.xlu0 %65 }
  0x87   :  { %v77_v42 = vmul.f32 %v75_v34, %v70_v40  ;;  %v76_v43 = vmul.f32 %v75_v34, %v66_v41 }
  0x89   :  { %v79_v49 = vadd.f32 %v77_v42, %v63_v46  ;;  %v78_v50 = vadd.f32 %v76_v43, %v62_v45 }
  0x8b   :  { %v82_v47 = vpop.permute.xlu1 %81  ;;  %v86_v48 = vpop.permute.xlu0 %85 }
  0x8c   :  { %v92_v51 = vmul.f32 %v91_v44, %v82_v47  ;;  %v93_v52 = vmul.f32 %v91_v44, %v86_v48 }
  0x8e   :  { %v94_v54 = vadd.f32 %v92_v51, %v78_v50  ;;  %v95_v55 = vadd.f32 %v93_v52, %v79_v49 }
  0x90   :  { %v103_v56 = vadd.f32 %v324_v53, %v94_v54  ;;  %v104_v57 = vadd.f32 %v324_v53, %v95_v55 }
  0x92   :  { %v105_v58 = vmax.f32 %v103_v56, 0.0  ;;  %v106_v59 = vmax.f32 %v104_v57, 0.0 }
  0x94   :  { %v107_v60 = vpack.c.bf16 %v106_v59, %v105_v58 }
  0x96   :  { %249 = vmatmul.mubr.bf16.vlgmr.msra.gmra.mxu0 %v107_v60 }
 0x156   :  { %v250_v1 = vpop.f32.mrf.mxu0 }
 0x157   :  { %v251_v3 = vadd.f32 %v250_v1, %v129_v63 }
 0x158   :  { %v252_v4 = vpop.f32.mrf.mxu0 }
 0x159   :  { %v259_v5 = vmax.f32 %v251_v3, 0.0  ;;  %v253_v7 = vadd.f32 %v252_v4, %v133_v0 }
 0x15a   :  { %v254_v9 = vpop.f32.mrf.mxu0 }
 0x15b   :  { %v260_v10 = vmax.f32 %v253_v7, 0.0  ;;  %v255_v11 = vadd.f32 %v254_v9, %v129_v63  ;;  %v275_v13 = vmul.f32 %v268_v6, %v259_v5 }
 0x15c   :  { %v256_v12 = vpop.f32.mrf.mxu0 }
 0x15d   :  { %v276_v14 = vmul.f32 %v272_v8, %v260_v10  ;;  %v261_v15 = vmax.f32 %v255_v11, 0.0  ;;  %v257_v16 = vadd.f32 %v256_v12, %v133_v0 }
 0x15f   :  { %v262_v17 = vmax.f32 %v257_v16, 0.0  ;;  %v279_v18 = vadd.f32 %v276_v14, %v275_v13  ;;  %v277_v19 = vmul.f32 %v268_v6, %v261_v15 }
 0x161   :  { %v278_v20 = vmul.f32 %v272_v8, %v262_v17  ;;  %280 = vadd.xlane.f32.xlu1 %v279_v18 }
 0x163   :  { %v282_v21 = vadd.f32 %v278_v20, %v277_v19 }
 0x165   :  { %283 = vadd.xlane.f32.xlu0 %v282_v21 }
 0x1ea   :  { %v281_v23 = vpop.xlane.xlu1 %280 }
 0x1eb   :  { %v292_v24 = vadd.f32 %v341_v22, %v281_v23 }
 0x1ed   :  { %v294_v25 = vsub.f32 0.0, %v292_v24 }
 0x1ee   :  { %v284_v26 = vpop.xlane.xlu0 %283 }
 0x1ef   :  { %v296_v27 = vmul.f32 1.442695, %v294_v25  ;;  %v293_v28 = vadd.f32 %v341_v22, %v284_v26 }
 0x1f1   :  { %377 = vpow2.f32 %v296_v27  ;;  %v295_v29 = vsub.f32 0.0, %v293_v28 }
 0x1f3   :  { %v298_v30 = vmul.f32 1.442695, %v295_v29 }
 0x1f5   :  { %379 = vpow2.f32 %v298_v30 }
 0x1fe   :  { %v378_v31 = vpop.eup %377 }
 0x1ff   :  { %v300_v32 = vadd.f32 1.0, %v378_v31 }
 0x201   :  { %381 = vrcp.f32 %v300_v32 }
 0x202   :  { %v380_v33 = vpop.eup %379 }
 0x203   :  { %v301_v34 = vadd.f32 1.0, %v380_v33 }
 0x205   :  { %383 = vrcp.f32 %v301_v34 }
 0x20e   :  { %v382_v35 = vpop.eup %381 }
 0x20f   :  { %v307_v36 = vsub.f32 1.0, %v382_v35  ;;  %305 = vst.msk [vmem:[%s518_s7] sm:$0xff] %vm304_vm0, %v382_v35 }
 0x211   :  { %311 = vrot.lane.b32.xlu1 %v307_v36, %s389_s6 }
 0x212   :  { %v384_v37 = vpop.eup %383 }
 0x213   :  { %v308_v38 = vsub.f32 1.0, %v384_v37  ;;  %306 = vst.msk [vmem:[%s518_s7 + $0x8] sm:$0xff] %vm304_vm0, %v384_v37 }
 0x215   :  { %313 = vrot.lane.b32.xlu0 %v308_v38, %s389_s6 }
 0x283   :  { %v312_v39 = vpop.permute.xlu1 %311 }
 0x284   :  { %318 = vst.msk [vmem:[%s518_s7] sm:$0xff] %vm317_vm1, %v312_v39 }
 0x287   :  { %v314_v40 = vpop.permute.xlu0 %313 }
 0x288   :  { %319 = vst.msk [vmem:[%s518_s7 + $0x8] sm:$0xff] %vm317_vm1, %v314_v40 }

</bundles_post_ra>
